<compile_context>
chip_gen: v7x
topology: tpu7x:2x2x1
jax: 0.10.0
libtpu: 0.0.40
codegen_flags: <defaults>
</compile_context>

<pallas_src>
import functools

import jax
import jax.numpy as jnp
from jax.experimental import pallas as pl
from jax.experimental.pallas import tpu as pltpu


def _round_up(x, m):
    return ((x + m - 1) // m) * m


# ----------------------------------------------------------------------------
# Pallas kernel: one control agent per grid step
# ----------------------------------------------------------------------------
def _lstm_ns_encoder_kernel(act_ref, w_ref, b_ref, out_ref, *, D, H, L):
    """Per-grid-step (one agent) refs:

    act_ref (B, AW)      f32   packed x | h | c | eps   (lane-padded to AW, multiple of 128)
    w_ref   (1, RW, WP)  bf16  packed rows [w1 ; W_ih ; W_hh ; W_heads], gate cols [i|f|o|g]
    b_ref   (1, 1, BW)   f32   packed [b1 | b_gates | b_heads]
    out_ref (B, OW)      f32   packed z | mu | logvar | h' | c'  (lane-padded to OW)
    """
    act = act_ref[...]
    x   = act[:, :D]
    h   = act[:, D:D + H]
    c   = act[:, D + H:D + 2 * H]
    eps = act[:, D + 2 * H:D + 2 * H + L]

    bf16 = jnp.bfloat16

    # fc1 + ReLU (bf16 x bf16 -> f32 on the MXU, f32 bias/accumulation)
    w1 = w_ref[0, :D, :H]
    x1 = jnp.dot(x.astype(bf16), w1, preferred_element_type=jnp.float32)
    x1 = jnp.maximum(x1 + b_ref[0, :, :H], 0.0)

    # LSTM gates; weight columns pre-ordered [i | f | o | g].  Two dots, no [x1,h] concat.
    w_ih = w_ref[0, D:D + H, :4 * H]
    w_hh = w_ref[0, D + H:D + 2 * H, :4 * H]
    gates = (jnp.dot(x1.astype(bf16), w_ih, preferred_element_type=jnp.float32)
             + jnp.dot(h.astype(bf16), w_hh, preferred_element_type=jnp.float32)
             + b_ref[0, :, H:5 * H])

    sg = jax.nn.sigmoid(gates[:, :3 * H])        # i, f, o  (single contiguous sigmoid pass)
    g_g = jnp.tanh(gates[:, 3 * H:4 * H])        # g        (single tanh pass)
    i_g = sg[:, :H]
    f_g = sg[:, H:2 * H]
    o_g = sg[:, 2 * H:3 * H]

    c_new = f_g * c + i_g * g_g
    h_new = o_g * jnp.tanh(c_new)

    # Fused VAE heads: one (H, 2L) matmul -> [mu | logvar]
    w_heads = w_ref[0, D + 2 * H:D + 3 * H, :2 * L]
    heads = (jnp.dot(h_new.astype(bf16), w_heads, preferred_element_type=jnp.float32)
             + b_ref[0, :, 5 * H:5 * H + 2 * L])
    mu = heads[:, :L]
    lv = heads[:, L:2 * L]
    z = mu + jnp.exp(0.5 * lv) * eps

    # One wide, lane-aligned store per agent: z | mu | logvar | h' | c' | pad
    B = act.shape[0]
    pad_w = out_ref.shape[-1] - (3 * L + 2 * H)
    parts = [z, mu, lv, h_new, c_new]
    if pad_w:
        parts.append(jnp.zeros((B, pad_w), jnp.float32))
    out_ref[...] = jnp.concatenate(parts, axis=-1)


# ----------------------------------------------------------------------------
# Wrapper reproducing LSTMNSEncoder.forward semantics (both torch branches)
# ----------------------------------------------------------------------------
def lstm_ns_encoder_forward(inputs, hidden, kparams, eps, *, n_control, input_shape):
    """inputs: (n_control, D) for the proxy branch or (B*n_control, D) for the batched
    branch.  hidden = (h, c), each (B, n_control, H) (B=1 for the proxy branch).
    eps: reparameterization noise, (B, n_control, latent)."""
    h, c = hidden
    H = h.shape[-1]
    L = eps.shape[-1]
    D = input_shape

    x = inputs.reshape(-1, n_control, D)          # (B, nc, D); free view, both branches
    B = x.shape[0]

    AW = _round_up(D + 2 * H + L, 128)            # per-agent activation lane width
    OW = _round_up(3 * L + 2 * H, 128)            # per-agent output lane width

    # Single packed activation slab: x | h | c | eps | pad  -> (B, nc*AW)
    parts = [x.astype(jnp.float32), h.astype(jnp.float32),
             c.astype(jnp.float32), eps.astype(jnp.float32)]
    pad_w = AW - (D + 2 * H + L)
    if pad_w:
        parts.append(jnp.zeros((B, n_control, pad_w), jnp.float32))
    act = jnp.concatenate(parts, axis=-1).reshape(B, n_control * AW)

    w_slab = kparams["w"]                         # (nc, RW, WP) bf16
    b_slab = kparams["b"]                         # (nc, 1, BW)  f32
    RW, WP = w_slab.shape[1], w_slab.shape[2]
    BW = b_slab.shape[2]

    out = pl.pallas_call(
        functools.partial(_lstm_ns_encoder_kernel, D=D, H=H, L=L),
        grid=(n_control,),
        in_specs=[
            pl.BlockSpec((B, AW), lambda i: (0, i)),        # agent i's activation slab
            pl.BlockSpec((1, RW, WP), lambda i: (i, 0, 0)),  # agent i's weights (bf16)
            pl.BlockSpec((1, 1, BW), lambda i: (i, 0, 0)),   # agent i's biases (f32)
        ],
        out_specs=pl.BlockSpec((B, OW), lambda i: (0, i)),
        out_shape=jax.ShapeDtypeStruct((B, n_control * OW), jnp.float32),
        compiler_params=pltpu.CompilerParams(dimension_semantics=("parallel",)),
    )(act, w_slab, b_slab)

    out3 = out.reshape(B, n_control, OW)
    z  = out3[..., :L].reshape(B * n_control, L)
    mu = out3[..., L:2 * L].reshape(B * n_control, L)
    lv = out3[..., 2 * L:3 * L].reshape(B * n_control, L)
    h_new = out3[..., 3 * L:3 * L + H]                    # (B, nc, H)
    c_new = out3[..., 3 * L + H:3 * L + 2 * H]            # (B, nc, H)
    # Proxy branch (B==1): z/mu/lv are (nc, L) and hidden is (1, nc, H) -> matches torch.
    return z, mu, lv, (h_new, c_new)


# ----------------------------------------------------------------------------
# Pure-JAX reference (torch-like per-agent loop, same bf16-matmul quantization as
# the kernel so the comparison is apples-to-apples).  NOTE: the bf16 weight and
# matmul-input rounding is an intentional deviation from an f32 PyTorch baseline.
# ----------------------------------------------------------------------------
def _reference_forward(inputs, hidden, params, eps, *, n_control, input_shape):
    h, c = hidden
    x = inputs.reshape(-1, n_control, input_shape)
    B = x.shape[0]
    H = h.shape[-1]
    L = eps.shape[-1]
    mm = lambda a, w: jnp.dot(a.astype(jnp.bfloat16), w.astype(jnp.bfloat16),
                              preferred_element_type=jnp.float32)
    zs, mus, lvs, hs, cs = [], [], [], [], []
    for i in range(n_control):
        xi, hi, ci = x[:, i], h[:, i], c[:, i]
        x1 = jax.nn.relu(mm(xi, params["w1"][i]) + params["b1"][i, 0])
        gates = (mm(x1, params["w_ih"][i]) + params["b_ih"][i, 0]
                 + mm(hi, params["w_hh"][i]) + params["b_hh"][i, 0])
        ig = jax.nn.sigmoid(gates[:, :H]); fg = jax.nn.sigmoid(gates[:, H:2 * H])
        gg = jnp.tanh(gates[:, 2 * H:3 * H]); og = jax.nn.sigmoid(gates[:, 3 * H:])
        cn = fg * ci + ig * gg
        hn = og * jnp.tanh(cn)
        mu = mm(hn, params["w_mu"][i]) + params["b_mu"][i, 0]
        lv = mm(hn, params["w_lv"][i]) + params["b_lv"][i, 0]
        z = mu + jnp.exp(0.5 * lv) * eps[:, i]
        zs.append(z); mus.append(mu); lvs.append(lv); hs.append(hn); cs.append(cn)
    inter = lambda ts: jnp.stack(ts, axis=1).reshape(B * n_control, ts[0].shape[-1])
    return (inter(zs), inter(mus), inter(lvs),
            (jnp.stack(hs, axis=1), jnp.stack(cs, axis=1)))


# ----------------------------------------------------------------------------
# Parameter construction
# ----------------------------------------------------------------------------
def make_params(key, n_control, D, H, L):
    """Raw per-agent parameters in x @ W layout (W = torch weight transposed)."""
    ks = jax.random.split(key, 10)
    u = lambda k, shape, fan: jax.random.uniform(k, shape, jnp.float32,
                                                 -1.0 / (fan ** 0.5), 1.0 / (fan ** 0.5))
    return {
        "w1":   u(ks[0], (n_control, D, H), D),
        "b1":   u(ks[1], (n_control, 1, H), D),
        "w_ih": u(ks[2], (n_control, H, 4 * H), H),
        "b_ih": u(ks[3], (n_control, 1, 4 * H), H),
        "w_hh": u(ks[4], (n_control, H, 4 * H), H),
        "b_hh": u(ks[5], (n_control, 1, 4 * H), H),
        "w_mu": u(ks[6], (n_control, H, L), H),
        "b_mu": u(ks[7], (n_control, 1, L), H),
        "w_lv": u(ks[8], (n_control, H, L), H),
        "b_lv": u(ks[9], (n_control, 1, L), H),
    }


def prepare_kernel_params(params):
    """Pack all per-agent weights into one bf16 slab and all biases into one f32 slab.
    Gate columns reordered from PyTorch [i,f,g,o] to [i,f,o,g] (sigmoid block first)."""
    nc, D, H = params["w1"].shape
    L = params["w_mu"].shape[-1]

    def reorder(w):  # (..., 4H):  [i,f,g,o] -> [i,f,o,g]
        return jnp.concatenate([w[..., :2 * H], w[..., 3 * H:4 * H], w[..., 2 * H:3 * H]],
                               axis=-1)

    w_ih = reorder(params["w_ih"])
    w_hh = reorder(params["w_hh"])
    b_g  = reorder(params["b_ih"] + params["b_hh"])                   # exact bias fold
    w_heads = jnp.concatenate([params["w_mu"], params["w_lv"]], axis=-1)   # (nc, H, 2L)
    b_heads = jnp.concatenate([params["b_mu"], params["b_lv"]], axis=-1)   # (nc, 1, 2L)

    WP = max(4 * H, 2 * L, H)
    pad = lambda w: jnp.pad(w, ((0, 0), (0, 0), (0, WP - w.shape[-1])))
    w_slab = jnp.concatenate([pad(params["w1"]), pad(w_ih), pad(w_hh), pad(w_heads)],
                             axis=1).astype(jnp.bfloat16)             # (nc, D+3H, WP)
    b_slab = jnp.concatenate([params["b1"], b_g, b_heads], axis=-1)    # (nc, 1, 5H+2L) f32
    return {"w": w_slab, "b": b_slab}


if __name__ == "__main__":
    key = jax.random.PRNGKey(0)
    n_control = 3
    B = 2            # batch per control agent
    D = 16           # input_shape
    H = 32           # rnn_hidden_dim
    L = 8            # latent dim

    k_in, k_h, k_c, k_eps, k_p = jax.random.split(key, 5)
    inputs = jax.random.normal(k_in, (B * n_control, D), jnp.float32)
    h0 = jax.random.normal(k_h, (B, n_control, H), jnp.float32)
    c0 = jax.random.normal(k_c, (B, n_control, H), jnp.float32)
    eps = jax.random.normal(k_eps, (B, n_control, L), jnp.float32)
    params = make_params(k_p, n_control, D, H, L)
    kparams = prepare_kernel_params(params)

    fwd = jax.jit(functools.partial(lstm_ns_encoder_forward,
                                    n_control=n_control, input_shape=D))

    def check(name, a, b, atol=2e-4, rtol=2e-3):
        if not jnp.allclose(a, b, atol=atol, rtol=rtol):
            err = float(jnp.max(jnp.abs(a - b)))
            raise AssertionError(f"{name} mismatch vs reference (max abs err {err:.3e})")

    # --- batched branch ---
    z, mu, logvar, (h1, c1) = fwd(inputs, (h0, c0), kparams, eps)
    jax.block_until_ready((z, mu, logvar, h1, c1))
    zr, mur, lvr, (hr, cr) = _reference_forward(inputs, (h0, c0), params, eps,
                                                n_control=n_control, input_shape=D)
    assert z.shape == (B * n_control, L) and mu.shape == (B * n_control, L)
    assert logvar.shape == (B * n_control, L)
    assert h1.shape == (B, n_control, H) and c1.shape == (B, n_control, H)
    for name, a, b in [("z", z, zr), ("mu", mu, mur), ("logvar", logvar, lvr),
                       ("h", h1, hr), ("c", c1, cr)]:
        check(name, a, b)

    # --- proxy branch (one sample per control agent) ---
    inputs1 = inputs[:n_control]                    # (nc, D)
    h01, c01, eps1 = h0[:1], c0[:1], eps[:1]        # batch 1
    z1, mu1, lv1, (h11, c11) = fwd(inputs1, (h01, c01), kparams, eps1)
    jax.block_until_ready((z1, mu1, lv1, h11, c11))
    zr1, mur1, lvr1, (hr1, cr1) = _reference_forward(inputs1, (h01, c01), params, eps1,
                                                     n_control=n_control, input_shape=D)
    assert z1.shape == (n_control, L) and h11.shape == (1, n_control, H)
    for name, a, b in [("z1", z1, zr1), ("mu1", mu1, mur1), ("lv1", lv1, lvr1),
                       ("h1", h11, hr1), ("c1", c11, cr1)]:
        check(name, a, b)

    print("KERNEL_OK")
</pallas_src>

<mosaic_0001>
module attributes {stable_mosaic.version = 11 : i64} {
  func.func @_lstm_ns_encoder_kernel(%arg0: i32, %arg1: memref<2x128xf32, #tpu.memory_space<vmem>>, %arg2: memref<1x112x128xbf16, #tpu.memory_space<vmem>>, %arg3: memref<1x1x176xf32, #tpu.memory_space<vmem>>, %arg4: memref<2x128xf32, #tpu.memory_space<vmem>>) attributes {dimension_semantics = [#tpu.dimension_semantics<parallel>], iteration_bounds = array<i64: 3>, scalar_prefetch = 0 : i64, scratch_operands = 0 : i64, tpu.core_type = #tpu.core_type<tc>, window_params = [{transform_indices = @transform_0, window_bounds = array<i64: 2, 128>}, {transform_indices = @transform_1, window_bounds = array<i64: 1, 112, 128>}, {transform_indices = @transform_2, window_bounds = array<i64: 1, 1, 176>}, {transform_indices = @transform_3, window_bounds = array<i64: 2, 128>}]} {
    %c0 = arith.constant 0 : index
    %c0_0 = arith.constant 0 : index
    %0 = vector.load %arg1[%c0, %c0_0] : memref<2x128xf32, #tpu.memory_space<vmem>>, vector<2x128xf32>
    %1 = vector.extract_strided_slice %0 {offsets = [0, 0], sizes = [2, 16], strides = [1, 1]} : vector<2x128xf32> to vector<2x16xf32>
    %2 = vector.extract_strided_slice %0 {offsets = [0, 16], sizes = [2, 32], strides = [1, 1]} : vector<2x128xf32> to vector<2x32xf32>
    %3 = vector.extract_strided_slice %0 {offsets = [0, 48], sizes = [2, 32], strides = [1, 1]} : vector<2x128xf32> to vector<2x32xf32>
    %4 = vector.extract_strided_slice %0 {offsets = [0, 80], sizes = [2, 8], strides = [1, 1]} : vector<2x128xf32> to vector<2x8xf32>
    %c0_1 = arith.constant 0 : index
    %c0_2 = arith.constant 0 : index
    %c0_3 = arith.constant 0 : index
    %5 = vector.load %arg2[%c0_1, %c0_2, %c0_3] : memref<1x112x128xbf16, #tpu.memory_space<vmem>>, vector<1x16x32xbf16>
    %6 = vector.shape_cast %5 : vector<1x16x32xbf16> to vector<16x32xbf16>
    %7 = arith.truncf %1 : vector<2x16xf32> to vector<2x16xbf16>
    %cst = arith.constant dense<0.000000e+00> : vector<2x32xf32>
    %8 = tpu.matmul %7, %6, %cst {dimension_numbers = #tpu.dot_dimension_numbers<[1], [0], [0], [1], [0, 0, 1, 1], [], []>} : vector<2x16xbf16>, vector<16x32xbf16>, vector<2x32xf32> -> vector<2x32xf32>
    %c0_4 = arith.constant 0 : index
    %c0_5 = arith.constant 0 : index
    %c0_6 = arith.constant 0 : index
    %9 = vector.load %arg3[%c0_4, %c0_5, %c0_6] : memref<1x1x176xf32, #tpu.memory_space<vmem>>, vector<1x1x32xf32>
    %10 = vector.shape_cast %9 : vector<1x1x32xf32> to vector<1x32xf32>
    %11 = vector.broadcast %10 : vector<1x32xf32> to vector<2x32xf32>
    %12 = arith.addf %8, %11 : vector<2x32xf32>
    %cst_7 = arith.constant 0.000000e+00 : f32
    %13 = vector.broadcast %cst_7 : f32 to vector<2x32xf32>
    %14 = arith.maximumf %12, %13 : vector<2x32xf32>
    %c0_8 = arith.constant 0 : index
    %c16 = arith.constant 16 : index
    %c0_9 = arith.constant 0 : index
    %15 = vector.load %arg2[%c0_8, %c16, %c0_9] : memref<1x112x128xbf16, #tpu.memory_space<vmem>>, vector<1x32x128xbf16>
    %16 = vector.shape_cast %15 : vector<1x32x128xbf16> to vector<32x128xbf16>
    %c0_10 = arith.constant 0 : index
    %c48 = arith.constant 48 : index
    %c0_11 = arith.constant 0 : index
    %17 = vector.load %arg2[%c0_10, %c48, %c0_11] : memref<1x112x128xbf16, #tpu.memory_space<vmem>>, vector<1x32x128xbf16>
    %18 = vector.shape_cast %17 : vector<1x32x128xbf16> to vector<32x128xbf16>
    %19 = arith.truncf %14 : vector<2x32xf32> to vector<2x32xbf16>
    %cst_12 = arith.constant dense<0.000000e+00> : vector<2x128xf32>
    %20 = tpu.matmul %19, %16, %cst_12 {dimension_numbers = #tpu.dot_dimension_numbers<[1], [0], [0], [1], [0, 0, 1, 1], [], []>} : vector<2x32xbf16>, vector<32x128xbf16>, vector<2x128xf32> -> vector<2x128xf32>
    %21 = arith.truncf %2 : vector<2x32xf32> to vector<2x32xbf16>
    %cst_13 = arith.constant dense<0.000000e+00> : vector<2x128xf32>
    %22 = tpu.matmul %21, %18, %cst_13 {dimension_numbers = #tpu.dot_dimension_numbers<[1], [0], [0], [1], [0, 0, 1, 1], [], []>} : vector<2x32xbf16>, vector<32x128xbf16>, vector<2x128xf32> -> vector<2x128xf32>
    %23 = arith.addf %20, %22 : vector<2x128xf32>
    %c0_14 = arith.constant 0 : index
    %c0_15 = arith.constant 0 : index
    %c32 = arith.constant 32 : index
    %24 = vector.load %arg3[%c0_14, %c0_15, %c32] : memref<1x1x176xf32, #tpu.memory_space<vmem>>, vector<1x1x128xf32>
    %25 = vector.shape_cast %24 : vector<1x1x128xf32> to vector<1x128xf32>
    %26 = vector.broadcast %25 : vector<1x128xf32> to vector<2x128xf32>
    %27 = arith.addf %23, %26 : vector<2x128xf32>
    %28 = vector.extract_strided_slice %27 {offsets = [0, 0], sizes = [2, 96], strides = [1, 1]} : vector<2x128xf32> to vector<2x96xf32>
    %29 = arith.negf %28 : vector<2x96xf32>
    %30 = math.exp %29 : vector<2x96xf32>
    %cst_16 = arith.constant 1.000000e+00 : f32
    %31 = vector.broadcast %cst_16 : f32 to vector<2x96xf32>
    %32 = arith.addf %31, %30 : vector<2x96xf32>
    %33 = arith.divf %31, %32 : vector<2x96xf32>
    %34 = vector.extract_strided_slice %27 {offsets = [0, 96], sizes = [2, 32], strides = [1, 1]} : vector<2x128xf32> to vector<2x32xf32>
    %35 = math.tanh %34 : vector<2x32xf32>
    %36 = vector.extract_strided_slice %33 {offsets = [0, 0], sizes = [2, 32], strides = [1, 1]} : vector<2x96xf32> to vector<2x32xf32>
    %37 = vector.extract_strided_slice %33 {offsets = [0, 32], sizes = [2, 32], strides = [1, 1]} : vector<2x96xf32> to vector<2x32xf32>
    %38 = vector.extract_strided_slice %33 {offsets = [0, 64], sizes = [2, 32], strides = [1, 1]} : vector<2x96xf32> to vector<2x32xf32>
    %39 = arith.mulf %37, %3 : vector<2x32xf32>
    %40 = arith.mulf %36, %35 : vector<2x32xf32>
    %41 = arith.addf %39, %40 : vector<2x32xf32>
    %42 = math.tanh %41 : vector<2x32xf32>
    %43 = arith.mulf %38, %42 : vector<2x32xf32>
    %c0_17 = arith.constant 0 : index
    %c80 = arith.constant 80 : index
    %c0_18 = arith.constant 0 : index
    %44 = vector.load %arg2[%c0_17, %c80, %c0_18] : memref<1x112x128xbf16, #tpu.memory_space<vmem>>, vector<1x32x16xbf16>
    %45 = vector.shape_cast %44 : vector<1x32x16xbf16> to vector<32x16xbf16>
    %46 = arith.truncf %43 : vector<2x32xf32> to vector<2x32xbf16>
    %cst_19 = arith.constant dense<0.000000e+00> : vector<2x16xf32>
    %47 = tpu.matmul %46, %45, %cst_19 {dimension_numbers = #tpu.dot_dimension_numbers<[1], [0], [0], [1], [0, 0, 1, 1], [], []>} : vector<2x32xbf16>, vector<32x16xbf16>, vector<2x16xf32> -> vector<2x16xf32>
    %c0_20 = arith.constant 0 : index
    %c0_21 = arith.constant 0 : index
    %c160 = arith.constant 160 : index
    %48 = vector.load %arg3[%c0_20, %c0_21, %c160] : memref<1x1x176xf32, #tpu.memory_space<vmem>>, vector<1x1x16xf32>
    %49 = vector.shape_cast %48 : vector<1x1x16xf32> to vector<1x16xf32>
    %50 = vector.broadcast %49 : vector<1x16xf32> to vector<2x16xf32>
    %51 = arith.addf %47, %50 : vector<2x16xf32>
    %52 = vector.extract_strided_slice %51 {offsets = [0, 0], sizes = [2, 8], strides = [1, 1]} : vector<2x16xf32> to vector<2x8xf32>
    %53 = vector.extract_strided_slice %51 {offsets = [0, 8], sizes = [2, 8], strides = [1, 1]} : vector<2x16xf32> to vector<2x8xf32>
    %cst_22 = arith.constant 5.000000e-01 : f32
    %54 = vector.broadcast %cst_22 : f32 to vector<2x8xf32>
    %55 = arith.mulf %54, %53 : vector<2x8xf32>
    %56 = math.exp %55 : vector<2x8xf32>
    %57 = arith.mulf %56, %4 : vector<2x8xf32>
    %58 = arith.addf %52, %57 : vector<2x8xf32>
    %cst_23 = arith.constant 0.000000e+00 : f32
    %59 = vector.broadcast %cst_23 : f32 to vector<2x40xf32>
    %60 = tpu.concatenate %58, %52, %53, %43, %41, %59 in 1 : vector<2x8xf32>, vector<2x8xf32>, vector<2x8xf32>, vector<2x32xf32>, vector<2x32xf32>, vector<2x40xf32> -> vector<2x128xf32>
    %c0_24 = arith.constant 0 : index
    %c0_25 = arith.constant 0 : index
    %61 = vector.load %arg4[%c0_24, %c0_25] : memref<2x128xf32, #tpu.memory_space<vmem>>, vector<2x128xf32>
    tpu.vector_store %arg4[%c0_24, %c0_25], %60 {strides = array<i32>} : memref<2x128xf32, #tpu.memory_space<vmem>>, vector<2x128xf32>,
    return
  }
  func.func @transform_0(%arg0: i32) -> (i32, i32) {
    %c0_i32 = arith.constant 0 : i32
    %c0_i32_0 = arith.constant 0 : i32
    return %c0_i32, %arg0 : i32, i32
  }
  func.func @transform_1(%arg0: i32) -> (i32, i32, i32) {
    %c0_i32 = arith.constant 0 : i32
    %c0_i32_0 = arith.constant 0 : i32
    %c0_i32_1 = arith.constant 0 : i32
    return %arg0, %c0_i32, %c0_i32_0 : i32, i32, i32
  }
  func.func @transform_2(%arg0: i32) -> (i32, i32, i32) {
    %c0_i32 = arith.constant 0 : i32
    %c0_i32_0 = arith.constant 0 : i32
    %c0_i32_1 = arith.constant 0 : i32
    return %arg0, %c0_i32, %c0_i32_0 : i32, i32, i32
  }
  func.func @transform_3(%arg0: i32) -> (i32, i32) {
    %c0_i32 = arith.constant 0 : i32
    %c0_i32_0 = arith.constant 0 : i32
    return %c0_i32, %arg0 : i32, i32
  }
}

</mosaic_0001>

<bundles_post_ra>
// kernel: lstm_ns_encoder_forward.1
= control target key start
LH: loop header
LB: loop body
LE: loop exit
PB: predicated region body
PF: predicated region fallthrough
CT: control target
= control target key end

     0   :  { %8 = vsyncpa [#allocation3], 0  ;;  %s1049_s0 = inlined_call_operand.vmem [shape: f32[2,384], index: 0, kind: input, shape index: {}]   ;;  %s1050_s1 = inlined_call_operand.hbm [shape: bf16[3,112,128], index: 1, kind: input, shape index: {}]   ;;  %s1051_s2 = inlined_call_operand.vmem [shape: f32[3,1,176], index: 2, kind: input, shape index: {}]   ;;  %s1052_s3 = inlined_call_operand.vmem [shape: f32[2,384], index: 3, kind: output, shape index: {}]  }
   0x1   :  { %10 = vsyncpa [#allocation3 + $0x1], 0  ;;  %s887_s12 = smov 0   ;;  %s889_s13 = smov 0  }
   0x2   :  { %s891_s14 = smov 0   ;;  %s893_s15 = smov 0  }
   0x3 LB: > { %s906_s16 = sadd.s32 4294967295, %s851_s15   ;;  %s909_s17 = sadd.s32 1, %s851_s15   ;;  %s851_s15 = sphi %s893_s15, %s1059_s15   ;;  %s847_s14 = sphi %s891_s14, %s1058_s14   ;;  %s843_s13 = sphi %s889_s13, %s1057_s13   ;;  %s839_s12 = sphi %s887_s12, %s1056_s12  }
   0x4   : > { %s46_s18 = ssub.s32 %s851_s15, %s909_s17  ;;  %s49_s19 = sadd.s32 1, %s847_s14 }
   0x5   : > { %p47_p0 = scmp.eq.s32.totalorder %s46_s18, 0  ;;  %p56_p1 = scmp.ne.s32.totalorder %s847_s14, %s843_s13 }
   0x6   : > { %p57_p2 = scmp.eq.s32.totalorder %s851_s15, 0  ;;  %p62_p3 = scmp.ne.s32.totalorder %s843_s13, %s839_s12 }
   0x7   : > { %s919_s20 = scalar_select %p47_p0, %s847_s14, %s49_s19  }
   0x8   : > { %p58_p4 = por %p57_p2, %p56_p1  ;;  %p63_p5 = scmp.eq.s32.totalorder %s906_s16, 0 }
   0x9   : > { %p724_p6 = scmp.lt.s32.totalorder %s851_s15, 3  ;;  %s145_s22 = sand.u32 1, %s847_s14  }
   0xa   : > { %p923_p7 = por %p63_p5, %p62_p3  ;;  %s715_s23 = smul.u32 56, %s145_s22 }
   0xb   : > { %s716_s24 = smul.u32 896, %s851_s15  ;;  %p929_p8 = pnand %p724_p6, %p58_p4 }
   0xc   : > { %s149_s29 = scalar_lea.vmem [#allocation2], %s715_s23  ;;  %s941_s4 = scalar_lea.sflag [#allocation3], %s145_s22 }
   0xd   : > { %s936_s28 = scalar_lea.hbm %s1050_s1, %s716_s24  ;;  %s156_s30 = sshll.u32 %s149_s29, 4  ;;  %s938_s30 = int_to_ptr.vmem [resolvable:$true] %s156_s30 }
   0xe   : > { %s787_s5 = scalar_lea.hbm %s936_s28, 896  ;;  %p789_p11 = pneg %p929_p8 }
   0xf   : > { %p788_p10 = scmp.ne.s32.totalorder %s936_s28, %s787_s5  ;;  %s792_s8 = scalar_lea.hbm %s1050_s1, 2688 }
  0x10   : > { %p793_p0 = scmp.lt.u32.totalorder %s936_s28, %s1050_s1  ;;  %p794_p1 = scmp.lt.u32.totalorder %s792_s8, %s787_s5 }
  0x11   : > { %p790_p12 = pnand %p789_p11, %p788_p10  ;;  %p796_p3 = scmp.lt.u32.totalorder %s787_s5, %s936_s28 }
  0x12   : > { %p795_p2 = por %p794_p1, %p793_p0 }
  0x13   : > { %p791_p13 = pneg %p790_p12 }
  0x14   : > { %p797_p4 = por %p796_p3, %p795_p2 }
  0x16   : > { %p798_p5 = pnand %p797_p4, %p791_p13 }
  0x18   : > { %801 = shalt.err (!%p798_p5)
}
  0x19   : > { %s802_s11 = scalar_lea.vmem %s938_s30, 896  ;;  %s853_s12 = smov [#allocation2]  }
  0x1a   : > { %p803_p6 = scmp.ne.s32.totalorder %s938_s30, %s802_s11  ;;  %s807_s18 = sshll.u32 %s853_s12, 4  ;;  %s808_s18 = int_to_ptr.vmem [resolvable:$false] %s807_s18 }
  0x1b   : > { %s809_s19 = scalar_lea.vmem %s808_s18, 1792  ;;  %p810_p9 = scmp.lt.s32.totalorder %s938_s30, %s808_s18 }
  0x1c   : > { %p805_p10 = pnand %p803_p6, %p789_p11  ;;  %p811_p0 = scmp.lt.s32.totalorder %s809_s19, %s802_s11 }
  0x1e   : > { %p806_p12 = pneg %p805_p10  ;;  %p812_p1 = por %p811_p0, %p810_p9 }
  0x20   : > { %p813_p2 = pnand %p812_p1, %p806_p12 }
  0x22   : > { %816 = shalt.err (!%p813_p2)
}
  0x23   : > { %s854_s22 = smov 64   ;;  %s855_s23 = smov 4  }
  0x24   : > { %723 = dma.hbm_to_vmem [thread:$0]  (!%p929_p8), %s936_s28, 896, %s938_s30, %s941_s4, %s854_s22, %s854_s22, %s855_s23  }
  0x25   : > { %p171_p11 = scmp.lt.s32.totalorder %s851_s15, 4  ;;  %p1055_p13 = scmp.ge.s32.totalorder %s851_s15, 1 }
  0x27   : > { %p172_p3 = pnand %p1055_p13, %p171_p11 }
  0x28   : > { %s177_s24 = sand.u32 (!%p172_p3), 1, %s843_s13  }
  0x29   : > { %175 = sbr.rel (%p172_p3) target bundleno = 1335 (0x537), region = 32  ;;  %s178_s27 = scalar_lea.sflag (!%p172_p3), [#allocation3], %s177_s24 }
  0x2a   : > { %s717_s26 = smul.u32 (!%p172_p3), 56, %s177_s24 }
  0x2c   : > { %s973_s29 = scalar_lea.vmem (!%p172_p3), [#allocation2], %s717_s26 }
  0x30   : > { %834 = dma.done.wait (%p923_p7), %s178_s27, 896  }
  0x31   : > { %836 = vsyncadd (%p923_p7), %s178_s27, 4294966400  ;;  %p211_p8 = scmp.lt.s32.totalorder %s906_s16, 2  ;;  %v856_v0 = vmov 0.0   ;;  %vm857_vm0 = vmmov 0   ;;  %v770_v1 = vld [vmem:[%s973_s29] sm:$0xff]   ;;  %vm241_vm1 = vcmask 130048   ;;  %v411_v8 = vlaneseq }
  0x32   : > { %685 = vmatprep.subr.bf16.mxu0 %v856_v0  ;;  %687 = vmatprep.mubr.msk.bf16.mxu0 %vm857_vm0, %v856_v0  ;;  %v771_v4 = vld [vmem:[%s973_s29 + $0x18] sm:$0xff]   ;;  %v772_v5 = vld [vmem:[%s973_s29 + $0x8] sm:$0xff]   ;;  %v773_v6 = vld [vmem:[%s973_s29 + $0x20] sm:$0xff]   ;;  %s859_s6 = smov 96   ;;  %vm310_vm2 = vcmask 261120   ;;  %vm423_vm3 = vcmask 785408  }
  0x33   : > { %s1061_s16 = smov (!%p211_p8, %s906_s16), 2  ;;  %691 = vmatprep.subr.bf16.mxu1 %v856_v0  ;;  %695 = vmatprep.mubr.msk.bf16.mxu1 %vm857_vm0, %v856_v0  ;;  %v774_v7 = vld [vmem:[%s973_s29 + $0x10] sm:$0xff]   ;;  %v412_v9 = vshrl.u32 %v411_v8, 7  ;;  %s860_s7 = smov 32   ;;  %v775_v48 = vld [vmem:[%s973_s29 + $0x28] sm:$0xff]   ;;  %vm551_vm4 = vcmask 64512  }
  0x34   : > { %s987_s15 = sshll.u32 %s1061_s16, 1  ;;  %686 = vmatpush3.bf16.msra.mxu0 %v770_v1  ;;  %s858_s16 = smov 112   ;;  %692 = vmatpush3.bf16.msra.mxu1 %v771_v4  ;;  %v776_v49 = vld [vmem:[%s973_s29 + $0x30] sm:$0xff]   ;;  %vm554_vm5 = vcmask 195584   ;;  %vm556_vm6 = vcmask 457728   ;;  %vm558_vm7 = vcmask 719872  }
  0x35   : > { %s214_s28 = scalar_lea.vmem %s1049_s0, %s987_s15  ;;  %699 = vmatprep.subr.bf16.mxu0 %v856_v0  ;;  %693 = vmatprep.subr.bf16.mxu1 %v856_v0  ;;  %s1013_s5 = scalar_lea.vmem %s1051_s2, %s987_s15  ;;  %v413_v11 = vsub.s32 0, %v412_v9  ;;  %v417_v12 = vsub.s32 1, %v412_v9 }
  0x36   : > { %v994_v2 = vld [vmem:[%s214_s28] sm:$0x3]  ;;  %s861_s8 = smov 64   ;;  %s862_s9 = smov 56  }
  0x37   : > { %v227_v3 = vpack.c.bf16 %v994_v2, %v994_v2  ;;  %v409_v10 = vld [vmem:[%s1013_s5] sm:$0x3]  ;;  %s863_s10 = smov 8   ;;  %s864_s11 = smov 24  }
  0x38   : > { %694 = vmatpush3.bf16.msra.mxu1 %v773_v6  ;;  %v418_v13 = vrot.slane %v409_v10, %v417_v12  ;;  %v414_v14 = vrot.slane %v409_v10, %v413_v11  ;;  %v658_v16 = vld [vmem:[%s1013_s5] ss:$0 sm:$0xff]  ;;  %v668_v51 = vld [vmem:[%s1013_s5 + $0x1] ss:$0 sm:$0xff]  ;;  %s865_s12 = smov 120   ;;  %s866_s18 = smov 88  }
  0x39   : > { %296 = vrot.lane.b32.xlu0 %v227_v3, %s858_s16  ;;  %688 = vmatmul.mubr.msk.bf16.vlgmr.msra.gmra.mrb[0].mxu0 %vm241_vm1, %v227_v3  ;;  %s222_s23 = scalar_lea.vmem %s1052_s3, %s987_s15 }
  0x3a   : > { %700 = vmatpush3.bf16.msra.mxu0 %v772_v5  ;;  %703 = vmatprep.mubr.msk.bf16.mxu0 %vm857_vm0, %v856_v0 }
  0x3b   : > { %701 = vmatprep.subr.bf16.mxu0 %v856_v0  ;;  %707 = vmatprep.subr.bf16.mxu1 %v856_v0 }
  0x3c   : > { %421 = vrot.lane.b32.xlu1 %v418_v13, %s859_s6 }
  0x3d   : > { %419 = vrot.lane.b32.xlu0 %v414_v14, %s859_s6 }
  0x3e   : > { %702 = vmatpush3.bf16.msra.mxu0 %v774_v7 }
  0x41   : > { %435 = vrot.lane.b32.xlu0 %v994_v2, %s858_s16 }
  0xab   : > { %v297_v15 = vpop.permute.xlu0 %296 }
  0xac   : > { %696 = vmatmul.mubr.msk.bf16.vlgmr.msra.gmra.mrb[0].mxu1 %vm310_vm2, %v297_v15 }
  0xad   : > { %711 = vmatprep.mubr.msk.bf16.mxu1 %vm857_vm0, %v856_v0  ;;  %708 = vmatpush3.bf16.msra.mxu1 %v775_v48 }
  0xae   : > { %v422_v28 = vpop.permute.xlu1 %421  ;;  %709 = vmatprep.subr.bf16.mxu1 %v856_v0 }
  0xaf   : > { %v420_v29 = vpop.permute.xlu0 %419 }
  0xb0   : > { %v424_v31 = vsel %vm423_vm3, %v420_v29, %v422_v28 }
  0xb1   : > { %710 = vmatpush3.bf16.msra.mxu1 %v776_v49 }
  0xb3   : > { %v436_v44 = vpop.permute.xlu0 %435 }
 0x10c   : > { %v279_v17 = vpop.f32.mrb[0].mxu0 }
 0x10d   : > { %v280_v18 = vadd.f32 %v658_v16, %v279_v17  ;;  %v689_v19 = vpop.f32.mrb[1].mxu0 }
 0x10e   : > { %v282_v20 = vpop.f32.mrb[2].mxu0 }
 0x10f   : > { %v285_v21 = vmax.f32 %v280_v18, 0.0  ;;  %v690_v22 = vpop.f32.mrb[3].mxu0 }
 0x111   : > { %v294_v23 = vpack.c.bf16 %v285_v21, %v285_v21 }
 0x113   : > { %704 = vmatmul.mubr.msk.bf16.vlgmr.msra.gmra.mrb[4].mxu0 %vm310_vm2, %v294_v23 }
 0x17f   : > { %v348_v24 = vpop.f32.mrb[0].mxu1 }
 0x180   : > { %v697_v25 = vpop.f32.mrb[1].mxu1 }
 0x181   : > { %v351_v26 = vpop.f32.mrb[2].mxu1 }
 0x182   : > { %v698_v27 = vpop.f32.mrb[3].mxu1 }
 0x1e6   : > { %v403_v30 = vpop.f32.mrb[4].mxu0 }
 0x1e7   : > { %v404_v32 = vadd.f32 %v403_v30, %v348_v24  ;;  %v705_v33 = vpop.f32.mrb[5].mxu0 }
 0x1e8   : > { %v406_v34 = vpop.f32.mrb[6].mxu0 }
 0x1e9   : > { %v426_v35 = vadd.f32 %v424_v31, %v404_v32  ;;  %v706_v36 = vpop.f32.mrb[7].mxu0 }
 0x1eb   : > { %777 = vtanh.f32 %v426_v35  ;;  %v667_v38 = vmul.f32 -1.442695, %v426_v35 }
 0x1ed   : > { %779 = vpow2.f32 %v667_v38 }
 0x1f5   : > { %v778_v37 = vpop.eup %777 }
 0x1f6   : > { %440 = vrot.lane.b32.xlu1 %v778_v37, %s860_s7 }
 0x1f7   : > { %v780_v39 = vpop.eup %779 }
 0x1f8   : > { %v430_v40 = vadd.f32 1.0, %v780_v39 }
 0x1fa   : > { %781 = vrcp.f32 %v430_v40 }
 0x204   : > { %v782_v41 = vpop.eup %781 }
 0x205   : > { %v438_v45 = vmul.f32 %v782_v41, %v436_v44 }
 0x268   : > { %v441_v42 = vpop.permute.xlu1 %440 }
 0x269   : > { %v443_v43 = vmul.f32 %v782_v41, %v441_v42 }
 0x26b   : > { %445 = vrot.lane.b32.xlu1 %v443_v43, %s860_s7 }
 0x2dd   : > { %v446_v46 = vpop.permute.xlu1 %445 }
 0x2de   : > { %v448_v47 = vadd.f32 %v446_v46, %v438_v45 }
 0x2e0   : > { %783 = vtanh.f32 %v448_v47 }
 0x2ea   : > { %v784_v50 = vpop.eup %783 }
 0x2eb   : > { %451 = vrot.lane.b32.xlu0 %v784_v50, %s860_s7 }
 0x2ef   : > { %481 = vrot.lane.b32.xlu0 %v668_v51, %s859_s6 }
 0x35d   : > { %v452_v52 = vpop.permute.xlu0 %451 }
 0x35e   : > { %v454_v53 = vmul.f32 %v782_v41, %v452_v52 }
 0x360   : > { %v459_v54 = vpack.c.bf16 %v454_v53, %v454_v53 }
 0x361   : > { %v482_v56 = vpop.permute.xlu0 %481 }
 0x362   : > { %467 = vrot.lane.b32.xlu1 %v459_v54, %s861_s8 }
 0x366   : > { %530 = vrot.lane.b32.xlu1 %v994_v2, %s862_s9 }
 0x3d4   : > { %v468_v55 = vpop.permute.xlu1 %467 }
 0x3d5   : > { %712 = vmatmul.mubr.msk.bf16.vlgmr.msra.gmra.mrb[4].mxu1 %vm310_vm2, %v468_v55 }
 0x3d8   : > { %v531_v0 = vpop.permute.xlu1 %530 }
 0x4a8   : > { %v521_v57 = vpop.f32.mrb[4].mxu1 }
 0x4a9   : > { %v522_v58 = vadd.f32 %v521_v57, %v482_v56  ;;  %v713_v59 = vpop.f32.mrb[5].mxu1 }
 0x4aa   : > { %v524_v60 = vpop.f32.mrb[6].mxu1 }
 0x4ab   : > { %v527_v61 = vmul.f32 0.5, %v522_v58  ;;  %v714_v62 = vpop.f32.mrb[7].mxu1  ;;  %540 = vrot.lane.b32.xlu1 %v522_v58, %s863_s10 }
 0x4ad   : > { %v528_v63 = vmul.f32 1.442695, %v527_v61 }
 0x4af   : > { %785 = vpow2.f32 %v528_v63  ;;  %548 = vrot.lane.b32.xlu1 %v448_v47, %s864_s11 }
 0x4b9   : > { %v786_v1 = vpop.eup %785 }
 0x4ba   : > { %v533_v3 = vmul.f32 %v786_v1, %v531_v0 }
 0x4bc   : > { %535 = vrot.lane.b32.xlu0 %v533_v3, %s865_s12 }
 0x4c0   : > { %544 = vrot.lane.b32.xlu0 %v454_v53, %s866_s18 }
 0x51d   : > { %v541_v2 = vpop.permute.xlu1 %540 }
 0x521   : > { %v549_v9 = vpop.permute.xlu1 %548 }
 0x52e   : > { %v536_v4 = vpop.permute.xlu0 %535 }
 0x52f   : > { %v538_v5 = vadd.f32 %v536_v4, %v522_v58 }
 0x531   : > { %v552_v6 = vsel %vm551_vm4, %v538_v5, %v541_v2 }
 0x532   : > { %v553_v7 = vsel %vm241_vm1, %v552_v6, %v541_v2  ;;  %v545_v8 = vpop.permute.xlu0 %544 }
 0x533   : > { %v555_v10 = vsel %vm554_vm5, %v553_v7, %v545_v8 }
 0x534   : > { %v557_v11 = vsel %vm556_vm6, %v555_v10, %v549_v9 }
 0x535   : > { %v559_v12 = vsel %vm558_vm7, %v557_v11, 0.0 }
 0x536   : > { %560 = vst [vmem:[%s222_s23] sm:$0x3] %v559_v12 }
 0x537 PF: > { %p13_p7 = scmp.ge.s32.totalorder %s909_s17, 5   ;;  %s1056_s12 = smov %s843_s13 }
 0x538   : > { %s1057_s13 = smov %s847_s14  ;;  %s1058_s14 = smov %s919_s20 }
 0x539   : > { %s1059_s15 = smov %s909_s17  ;;  %15 = sbr.rel (!%p13_p7) target bundleno = 3 (0x3), region = 78 }
 0x540   :  { %580 = vsyncpa [#allocation3], 1 }
 0x541   :  { %582 = vsyncpa [#allocation3 + $0x1], 1 }

</bundles_post_ra>
